<compile_context>
chip_gen: v5e
topology: v5e:2x2
jax: 0.10.0
libtpu: 0.0.40
codegen_flags: <defaults>
</compile_context>

<pallas_src>
import jax
import jax.numpy as jnp
from jax.experimental import pallas as pl
from jax.experimental.pallas import tpu as pltpu

KH, KW = 16, 5      # Conv2d kernel size (16, 5)
SH, SW = 1, 5       # Conv2d stride     (1, 5)


def _gemm_kernel(x_ref, w_ref, b_ref, o_ref):
    # x_ref: (K, NBLK)   im2col'd patch columns (lane-dense rhs block)
    # w_ref: (E, K)      flattened conv weight (VMEM-resident across steps)
    # b_ref: (E, 1)      conv bias
    # o_ref: (E, NBLK)   transposed patch embeddings (lane-dense stores)
    acc = jnp.dot(w_ref[...], x_ref[...], preferred_element_type=jnp.float32)
    o_ref[...] = (acc + b_ref[...]).astype(o_ref.dtype)


def patch_embedding_forward(x, conv_w, conv_b, cls_token, use_bf16_mxu=False):
    """Fused PatchEmbedding forward.

    x:         (B, C, H, W)    NCHW, like the PyTorch module
    conv_w:    (E, C, KH, KW)  PyTorch Conv2d weight layout
    conv_b:    (E,)
    cls_token: (1, 1, E)
    returns    (B, 1 + Ho*Wo, E)
    """
    B, C, H, W = x.shape
    E = conv_w.shape[0]
    Ho = (H - KH) // SH + 1
    Wo = (W - KW) // SW + 1
    P = Ho * Wo
    K = C * KH * KW

    # ---- wrapper-side im2col (one-time XLA ops, outside the hot loop) ------
    # stride_w == kernel_w -> W-patches don't overlap: crop + split W is free.
    if W != Wo * SW:
        x = x[..., :Wo * SW]
    x5 = x.reshape(B, C, H, Wo, KW)
    # 16 shifted H-windows stacked once by XLA; rows ordered (c, kh, kw) to
    # match conv_w.reshape(E, C*KH*KW); columns ordered (b, ho, wo).
    windows = jnp.stack([x5[:, :, kh:kh + Ho] for kh in range(KH)], axis=2)
    x_colT = jnp.transpose(windows, (1, 2, 5, 0, 3, 4)).reshape(K, B * P)

    w_mat = conv_w.reshape(E, K)
    b_col = conv_b.reshape(E, 1).astype(jnp.float32)

    if use_bf16_mxu:                       # hoisted casts (once, not per step)
        x_colT = x_colT.astype(jnp.bfloat16)
        w_mat = w_mat.astype(jnp.bfloat16)

    # ---- column tiling: lane-dense blocks, >=256 cols/step when possible ---
    n_tot = B * P
    nblk = 256 if n_tot >= 512 else 128
    n_pad = nblk * pl.cdiv(n_tot, nblk)
    if n_pad != n_tot:
        x_colT = jnp.pad(x_colT, ((0, 0), (0, n_pad - n_tot)))
    grid = (n_pad // nblk,)

    out_dtype = x.dtype
    cost = pl.CostEstimate(
        flops=2 * E * K * n_pad,
        transcendentals=0,
        bytes_accessed=(x_colT.size * x_colT.dtype.itemsize
                        + w_mat.size * w_mat.dtype.itemsize
                        + b_col.size * 4
                        + E * n_pad * jnp.dtype(out_dtype).itemsize),
    )

    out_T = pl.pallas_call(
        _gemm_kernel,
        out_shape=jax.ShapeDtypeStruct((E, n_pad), out_dtype),
        grid=grid,
        in_specs=[
            pl.BlockSpec((K, nblk), lambda i: (0, i)),   # rhs column block
            pl.BlockSpec((E, K), lambda i: (0, 0)),      # VMEM-resident weight
            pl.BlockSpec((E, 1), lambda i: (0, 0)),      # VMEM-resident bias
        ],
        out_specs=pl.BlockSpec((E, nblk), lambda i: (0, i)),
        compiler_params=pltpu.CompilerParams(
            dimension_semantics=("parallel",)),
        cost_estimate=cost,
    )(x_colT, w_mat, b_col)

    # ---- tiny XLA epilogue: back to (B, P, E) + cls-token concat -----------
    patches = out_T[:, :n_tot].T.reshape(B, P, E)
    cls = jnp.broadcast_to(cls_token.astype(out_dtype), (B, 1, E))
    return jnp.concatenate([cls, patches], axis=1)


def _reference_forward(x, conv_w, conv_b, cls_token):
    """Plain-JAX reference with the same semantics as the PyTorch module."""
    B = x.shape[0]
    E = conv_w.shape[0]
    tok = jax.lax.conv_general_dilated(
        x, conv_w, window_strides=(SH, SW), padding="VALID",
        dimension_numbers=("NCHW", "OIHW", "NCHW"),
        precision=jax.lax.Precision.HIGHEST)
    tok = tok + conv_b[None, :, None, None]
    tok = jnp.transpose(tok, (0, 2, 3, 1)).reshape(B, -1, E)
    cls = jnp.broadcast_to(cls_token, (B, 1, E))
    return jnp.concatenate([cls, tok], axis=1)


if __name__ == "__main__":
    fwd = jax.jit(patch_embedding_forward, static_argnames=("use_bf16_mxu",))

    # --- Test 1: module-like shapes (in_channels=1), E=32, B=8 -------------
    # Ho = 8, Wo = 8 -> P = 64 patches/image, GEMM K = 80, grid = (2,) x 256.
    B, C, H, W, E = 8, 1, 23, 40, 32
    key = jax.random.PRNGKey(0)
    k1, k2, k3, k4 = jax.random.split(key, 4)
    x = jax.random.normal(k1, (B, C, H, W), jnp.float32)
    conv_w = jax.random.normal(k2, (E, C, KH, KW), jnp.float32) * 0.1
    conv_b = jax.random.normal(k3, (E,), jnp.float32) * 0.1
    cls_token = jax.random.normal(k4, (1, 1, E), jnp.float32)

    out = jax.block_until_ready(fwd(x, conv_w, conv_b, cls_token))
    ref = _reference_forward(x, conv_w, conv_b, cls_token)
    assert out.shape == (B, 1 + 8 * 8, E), out.shape
    assert jnp.allclose(out, ref, atol=1e-3, rtol=1e-3), \
        float(jnp.max(jnp.abs(out - ref)))

    # --- Test 2: C>1 + W-crop path (review correctness concern) ------------
    B2, C2, H2, W2, E2 = 2, 2, 20, 27, 10     # Ho=5, Wo=5 (W cropped 27->25)
    j1, j2, j3, j4 = jax.random.split(jax.random.PRNGKey(1), 4)
    x2 = jax.random.normal(j1, (B2, C2, H2, W2), jnp.float32)
    w2 = jax.random.normal(j2, (E2, C2, KH, KW), jnp.float32) * 0.1
    b2 = jax.random.normal(j3, (E2,), jnp.float32) * 0.1
    c2 = jax.random.normal(j4, (1, 1, E2), jnp.float32)
    out2 = jax.block_until_ready(fwd(x2, w2, b2, c2))
    ref2 = _reference_forward(x2, w2, b2, c2)
    assert out2.shape == (B2, 1 + 5 * 5, E2), out2.shape
    assert jnp.allclose(out2, ref2, atol=1e-3, rtol=1e-3), \
        float(jnp.max(jnp.abs(out2 - ref2)))

    # --- Test 3: bf16 MXU feed (casts hoisted to wrapper), f32 accumulate ---
    out_bf = jax.block_until_ready(
        fwd(x, conv_w, conv_b, cls_token, use_bf16_mxu=True))
    assert out_bf.shape == ref.shape, out_bf.shape
    assert jnp.allclose(out_bf, ref, atol=8e-2, rtol=8e-2), \
        float(jnp.max(jnp.abs(out_bf - ref)))

    print("KERNEL_OK")
</pallas_src>

<mosaic_0001>
module attributes {stable_mosaic.version = 11 : i64} {
  func.func @_gemm_kernel(%arg0: i32, %arg1: memref<80x256xf32, #tpu.memory_space<vmem>>, %arg2: memref<32x80xf32, #tpu.memory_space<vmem>>, %arg3: memref<32x1xf32, #tpu.memory_space<vmem>>, %arg4: memref<32x256xf32, #tpu.memory_space<vmem>>) attributes {dimension_semantics = [#tpu.dimension_semantics<parallel>], iteration_bounds = array<i64: 2>, scalar_prefetch = 0 : i64, scratch_operands = 0 : i64, tpu.core_type = #tpu.core_type<tc>, window_params = [{transform_indices = @transform_0, window_bounds = array<i64: 80, 256>}, {pipeline_mode = #tpu.pipeline_mode<synchronous>, transform_indices = @transform_1, window_bounds = array<i64: 32, 80>}, {pipeline_mode = #tpu.pipeline_mode<synchronous>, transform_indices = @transform_2, window_bounds = array<i64: 32, 1>}, {transform_indices = @transform_3, window_bounds = array<i64: 32, 256>}]} {
    %c0 = arith.constant 0 : index
    %c0_0 = arith.constant 0 : index
    %0 = vector.load %arg2[%c0, %c0_0] : memref<32x80xf32, #tpu.memory_space<vmem>>, vector<32x80xf32>
    %c0_1 = arith.constant 0 : index
    %c0_2 = arith.constant 0 : index
    %1 = vector.load %arg1[%c0_1, %c0_2] : memref<80x256xf32, #tpu.memory_space<vmem>>, vector<80x256xf32>
    %cst = arith.constant dense<0.000000e+00> : vector<32x256xf32>
    %2 = tpu.matmul %0, %1, %cst {dimension_numbers = #tpu.dot_dimension_numbers<[1], [0], [0], [1], [0, 0, 1, 1], [], []>} : vector<32x80xf32>, vector<80x256xf32>, vector<32x256xf32> -> vector<32x256xf32>
    %c0_3 = arith.constant 0 : index
    %c0_4 = arith.constant 0 : index
    %3 = vector.load %arg3[%c0_3, %c0_4] : memref<32x1xf32, #tpu.memory_space<vmem>>, vector<32x1xf32>
    %4 = vector.broadcast %3 : vector<32x1xf32> to vector<32x256xf32>
    %5 = arith.addf %2, %4 : vector<32x256xf32>
    %c0_5 = arith.constant 0 : index
    %c0_6 = arith.constant 0 : index
    %6 = vector.load %arg4[%c0_5, %c0_6] : memref<32x256xf32, #tpu.memory_space<vmem>>, vector<32x256xf32>
    tpu.vector_store %arg4[%c0_5, %c0_6], %5 {strides = array<i32>} : memref<32x256xf32, #tpu.memory_space<vmem>>, vector<32x256xf32>,
    return
  }
  func.func @transform_0(%arg0: i32) -> (i32, i32) {
    %c0_i32 = arith.constant 0 : i32
    %c0_i32_0 = arith.constant 0 : i32
    return %c0_i32, %arg0 : i32, i32
  }
  func.func @transform_1(%arg0: i32) -> (i32, i32) {
    %c0_i32 = arith.constant 0 : i32
    %c0_i32_0 = arith.constant 0 : i32
    %c0_i32_1 = arith.constant 0 : i32
    return %c0_i32, %c0_i32_0 : i32, i32
  }
  func.func @transform_2(%arg0: i32) -> (i32, i32) {
    %c0_i32 = arith.constant 0 : i32
    %c0_i32_0 = arith.constant 0 : i32
    %c0_i32_1 = arith.constant 0 : i32
    return %c0_i32, %c0_i32_0 : i32, i32
  }
  func.func @transform_3(%arg0: i32) -> (i32, i32) {
    %c0_i32 = arith.constant 0 : i32
    %c0_i32_0 = arith.constant 0 : i32
    return %c0_i32, %arg0 : i32, i32
  }
}

</mosaic_0001>

<bundles_post_ra>
// kernel: patch_embedding_forward.1
= control target key start
LH: loop header
LB: loop body
LE: loop exit
PB: predicated region body
PF: predicated region fallthrough
CT: control target
= control target key end

     0   :  { %s566_s12 = smov 0   ;;  %s568_s13 = smov 0   ;;  %s746_s0 = inlined_call_operand.vmem [shape: f32[80,512], index: 0, kind: input, shape index: {}]   ;;  %s747_s1 = inlined_call_operand.vmem [shape: f32[32,80], index: 1, kind: input, shape index: {}]   ;;  %s748_s2 = inlined_call_operand.vmem [shape: f32[32,1], index: 2, kind: input, shape index: {}]   ;;  %s749_s3 = inlined_call_operand.vmem [shape: f32[32,512], index: 3, kind: output, shape index: {}]  }
   0x1   :  { %s570_s14 = smov 0  }
   0x2 LB: > { %s449_s15 = sadd.s32 4294967295, %s543_s14   ;;  %s583_s16 = sadd.s32 1, %s543_s14   ;;  %s543_s14 = sphi %s570_s14, %s753_s14   ;;  %s539_s13 = sphi %s568_s13, %s752_s13   ;;  %s535_s12 = sphi %s566_s12, %s751_s12  }
   0x3   : > { %s17_s17 = ssub.s32 %s543_s14, %s583_s16  ;;  %s20_s18 = sadd.s32 1, %s539_s13 }
   0x4   : > { %p18_p0 = scmp.eq.s32.totalorder %s17_s17, 0  ;;  %p27_p1 = scmp.ne.s32.totalorder %s539_s13, %s535_s12 }
   0x5   : > { %p28_p2 = scmp.eq.s32.totalorder %s543_s14, 0  ;;  %p99_p3 = scmp.eq.s32.totalorder %s449_s15, 1 }
   0x6   : > { %s594_s19 = scalar_select %p18_p0, %s539_s13, %s20_s18  }
   0x7   : > { %p29_p4 = por %p28_p2, %p27_p1  ;;  %p596_p5 = por %p99_p3, %p27_p1 }
   0x8   : > { %p452_p6 = scmp.ge.s32.totalorder %s543_s14, 2 }
   0xa   : > { %127 = sbr.rel (%p452_p6) target bundleno = 39 (0x27), region = 24 }
   0xf   : > { %130 = sbr.rel (!%p29_p4) target bundleno = 39 (0x27), region = 28  ;;  %s132_s21 = sand.u32 (%p29_p4), 1, %s539_s13  }
  0x10   : > { %s470_s22 = sshll.u32 (%p29_p4), %s543_s14, 4  ;;  %s492_s23 = smul.u32 (%p29_p4), 160, %s132_s21 }
  0x11   : > { %s606_s26 = scalar_lea.vmem (%p29_p4), %s746_s0, %s470_s22 }
  0x12   : > { %v150_v0 = vld [vmem:[%s606_s26] sm:$0xff] (%p29_p4)  ;;  %v152_v1 = vld [vmem:[%s606_s26 + $0x8] sm:$0xff] (%p29_p4)  ;;  %s611_s27 = scalar_lea.vmem (%p29_p4), [#allocation2], %s492_s23 }
  0x13   : > { %v154_v2 = vld [vmem:[%s606_s26 + $0x20] sm:$0xff] (%p29_p4)  ;;  %151 = vst [vmem:[%s611_s27] sm:$0xff] (%p29_p4), %v150_v0  ;;  %v156_v3 = vld [vmem:[%s606_s26 + $0x28] sm:$0xff] (%p29_p4) }
  0x14   : > { %153 = vst [vmem:[%s611_s27 + $0x8] sm:$0xff] %v152_v1  ;;  %v158_v4 = vld [vmem:[%s606_s26 + $0x40] sm:$0xff]  ;;  %v160_v5 = vld [vmem:[%s606_s26 + $0x48] sm:$0xff] }
  0x15   : > { %155 = vst [vmem:[%s611_s27 + $0x10] sm:$0xff] %v154_v2  ;;  %v162_v6 = vld [vmem:[%s606_s26 + $0x60] sm:$0xff]  ;;  %v164_v7 = vld [vmem:[%s606_s26 + $0x68] sm:$0xff] }
  0x16   : > { %157 = vst [vmem:[%s611_s27 + $0x18] sm:$0xff] %v156_v3  ;;  %v166_v8 = vld [vmem:[%s606_s26 + $0x80] sm:$0xff]  ;;  %v168_v9 = vld [vmem:[%s606_s26 + $0x88] sm:$0xff] }
  0x17   : > { %159 = vst [vmem:[%s611_s27 + $0x20] sm:$0xff] %v158_v4  ;;  %v170_v10 = vld [vmem:[%s606_s26 + $0xa0] sm:$0xff]  ;;  %v172_v11 = vld [vmem:[%s606_s26 + $0xa8] sm:$0xff] }
  0x18   : > { %161 = vst [vmem:[%s611_s27 + $0x28] sm:$0xff] %v160_v5  ;;  %v174_v12 = vld [vmem:[%s606_s26 + $0xc0] sm:$0xff]  ;;  %v176_v13 = vld [vmem:[%s606_s26 + $0xc8] sm:$0xff] }
  0x19   : > { %163 = vst [vmem:[%s611_s27 + $0x30] sm:$0xff] %v162_v6  ;;  %v178_v14 = vld [vmem:[%s606_s26 + $0xe0] sm:$0xff]  ;;  %v180_v15 = vld [vmem:[%s606_s26 + $0xe8] sm:$0xff] }
  0x1a   : > { %165 = vst [vmem:[%s611_s27 + $0x38] sm:$0xff] %v164_v7  ;;  %v182_v16 = vld [vmem:[%s606_s26 + $0x100] sm:$0xff]  ;;  %v184_v17 = vld [vmem:[%s606_s26 + $0x108] sm:$0xff] }
  0x1b   : > { %167 = vst [vmem:[%s611_s27 + $0x40] sm:$0xff] %v166_v8  ;;  %v186_v18 = vld [vmem:[%s606_s26 + $0x120] sm:$0xff]  ;;  %v188_v19 = vld [vmem:[%s606_s26 + $0x128] sm:$0xff] }
  0x1c   : > { %169 = vst [vmem:[%s611_s27 + $0x48] sm:$0xff] %v168_v9 }
  0x1d   : > { %171 = vst [vmem:[%s611_s27 + $0x50] sm:$0xff] %v170_v10 }
  0x1e   : > { %173 = vst [vmem:[%s611_s27 + $0x58] sm:$0xff] %v172_v11 }
  0x1f   : > { %175 = vst [vmem:[%s611_s27 + $0x60] sm:$0xff] %v174_v12 }
  0x20   : > { %177 = vst [vmem:[%s611_s27 + $0x68] sm:$0xff] %v176_v13 }
  0x21   : > { %179 = vst [vmem:[%s611_s27 + $0x70] sm:$0xff] %v178_v14 }
  0x22   : > { %181 = vst [vmem:[%s611_s27 + $0x78] sm:$0xff] %v180_v15 }
  0x23   : > { %183 = vst [vmem:[%s611_s27 + $0x80] sm:$0xff] %v182_v16 }
  0x24   : > { %185 = vst [vmem:[%s611_s27 + $0x88] sm:$0xff] %v184_v17 }
  0x25   : > { %187 = vst [vmem:[%s611_s27 + $0x90] sm:$0xff] %v186_v18 }
  0x26   : > { %189 = vst [vmem:[%s611_s27 + $0x98] sm:$0xff] %v188_v19 }
  0x27 PF: > { %p455_p7 = scmp.ge.s32.totalorder %s543_s14, 1  ;;  %p194_p8 = scmp.lt.s32.totalorder %s543_s14, 3 }
  0x29   : > { %p195_p9 = pnand %p455_p7, %p194_p8 }
  0x2a   : > { %s201_s28 = sand.u32 (!%p195_p9), 1, %s535_s12  }
  0x2b   : > { %198 = sbr.rel (%p195_p9) target bundleno = 223 (0xdf), region = 51  ;;  %s456_s27 = sshll.u32 (!%p195_p9), %s201_s28, 6 }
  0x2c   : > { %s493_s29 = smul.u32 (!%p195_p9), 160, %s201_s28 }
  0x2e   : > { %s661_s7 = scalar_lea.vmem (!%p195_p9), [#allocation2], %s493_s29  ;;  %s711_s29 = scalar_lea.vmem (!%p195_p9), [#allocation3], %s456_s27 }
  0x30   : > { %v545_v20 = vmov 0   ;;  %v251_v21 = vld [vmem:[%s748_s2 + $0x10] sm:$0xff]  ;;  %v249_v22 = vld [vmem:[%s748_s2] sm:$0xff]  ;;  %v248_v24 = vld [vmem:[%s661_s7 + $0x98] sm:$0xff]  ;;  %vm273_vm0 = vcmask 654336   ;;  %s471_s12 = sshll.u32 (%p596_p5), %s449_s15, 4 }
  0x31   : > { %520 = vset.pattern.permute.xlu1 %v545_v20  ;;  %519 = vset.pattern.permute.xlu0 %v545_v20  ;;  %v247_v23 = vld [vmem:[%s661_s7 + $0x90] sm:$0xff]  ;;  %v245_v25 = vld [vmem:[%s661_s7 + $0x80] sm:$0xff]  ;;  %v246_v26 = vld [vmem:[%s661_s7 + $0x88] sm:$0xff]  ;;  %s361_s4 = scalar_lea.vmem (%p596_p5), %s749_s3, %s471_s12 }
  0x32   : > { %265 = vperm.xlu1 %520, %v251_v21   ;;  %255 = vperm.xlu0 %519, %v249_v22   ;;  %v243_v27 = vld [vmem:[%s661_s7 + $0x70] sm:$0xff]  ;;  %v244_v28 = vld [vmem:[%s661_s7 + $0x78] sm:$0xff]  ;;  %v241_v29 = vld [vmem:[%s661_s7 + $0x60] sm:$0xff] }
  0x33   : > { %292 = vmatpush.msra.mxu0 %v247_v23  ;;  %472 = vmatpush.msra.mxu2 %v247_v23  ;;  %v242_v30 = vld [vmem:[%s661_s7 + $0x68] sm:$0xff]  ;;  %v239_v31 = vld [vmem:[%s661_s7 + $0x50] sm:$0xff]  ;;  %v240_v32 = vld [vmem:[%s661_s7 + $0x58] sm:$0xff] }
  0x34   : > { %321 = vmatpush.msra.mxu1 %v248_v24  ;;  %482 = vmatpush.msra.mxu3 %v248_v24  ;;  %v237_v33 = vld [vmem:[%s661_s7 + $0x40] sm:$0xff]  ;;  %v238_v34 = vld [vmem:[%s661_s7 + $0x48] sm:$0xff]  ;;  %v235_v35 = vld [vmem:[%s661_s7 + $0x30] sm:$0xff] }
  0x35   : > { %293 = vmatpush.msra.mxu0 %v245_v25  ;;  %473 = vmatpush.msra.mxu2 %v245_v25  ;;  %v236_v36 = vld [vmem:[%s661_s7 + $0x38] sm:$0xff]  ;;  %v233_v37 = vld [vmem:[%s661_s7 + $0x20] sm:$0xff]  ;;  %v234_v38 = vld [vmem:[%s661_s7 + $0x28] sm:$0xff] }
  0x36   : > { %322 = vmatpush.msra.mxu1 %v246_v26  ;;  %483 = vmatpush.msra.mxu3 %v246_v26  ;;  %v231_v39 = vld [vmem:[%s661_s7 + $0x10] sm:$0xff]  ;;  %v232_v40 = vld [vmem:[%s661_s7 + $0x18] sm:$0xff]  ;;  %v229_v41 = vld [vmem:[%s661_s7] sm:$0xff] }
  0x37   : > { %294 = vmatpush.msra.mxu0 %v243_v27  ;;  %474 = vmatpush.msra.mxu2 %v243_v27  ;;  %v230_v42 = vld [vmem:[%s661_s7 + $0x8] sm:$0xff]  ;;  %v225_v43 = vld [vmem:[%s747_s1] sm:$0xff]  ;;  %v227_v44 = vld [vmem:[%s747_s1 + $0x10] sm:$0xff] }
  0x38   : > { %323 = vmatpush.msra.mxu1 %v244_v28  ;;  %484 = vmatpush.msra.mxu3 %v244_v28  ;;  %v252_v45 = vld [vmem:[%s748_s2 + $0x18] sm:$0xff]  ;;  %v250_v46 = vld [vmem:[%s748_s2 + $0x8] sm:$0xff] }
  0x39   : > { %295 = vmatpush.msra.mxu0 %v241_v29  ;;  %475 = vmatpush.msra.mxu2 %v241_v29  ;;  %v226_v47 = vld [vmem:[%s747_s1 + $0x8] sm:$0xff]  ;;  %v228_v48 = vld [vmem:[%s747_s1 + $0x18] sm:$0xff] }
  0x3a   : > { %324 = vmatpush.msra.mxu1 %v242_v30  ;;  %485 = vmatpush.msra.mxu3 %v242_v30 }
  0x3b   : > { %296 = vmatpush.msra.mxu0 %v239_v31  ;;  %476 = vmatpush.msra.mxu2 %v239_v31 }
  0x3c   : > { %325 = vmatpush.msra.mxu1 %v240_v32  ;;  %486 = vmatpush.msra.mxu3 %v240_v32 }
  0x3d   : > { %297 = vmatpush.msra.mxu0 %v237_v33  ;;  %477 = vmatpush.msra.mxu2 %v237_v33 }
  0x3e   : > { %326 = vmatpush.msra.mxu1 %v238_v34  ;;  %487 = vmatpush.msra.mxu3 %v238_v34 }
  0x3f   : > { %298 = vmatpush.msra.mxu0 %v235_v35  ;;  %478 = vmatpush.msra.mxu2 %v235_v35 }
  0x40   : > { %327 = vmatpush.msra.mxu1 %v236_v36  ;;  %488 = vmatpush.msra.mxu3 %v236_v36 }
  0x41   : > { %299 = vmatpush.msra.mxu0 %v233_v37  ;;  %479 = vmatpush.msra.mxu2 %v233_v37 }
  0x42   : > { %328 = vmatpush.msra.mxu1 %v234_v38  ;;  %489 = vmatpush.msra.mxu3 %v234_v38 }
  0x43   : > { %300 = vmatpush.msra.mxu0 %v231_v39  ;;  %480 = vmatpush.msra.mxu2 %v231_v39 }
  0x44   : > { %329 = vmatpush.msra.mxu1 %v232_v40  ;;  %490 = vmatpush.msra.mxu3 %v232_v40 }
  0x45   : > { %301 = vmatpush.msra.mxu0 %v229_v41  ;;  %481 = vmatpush.msra.mxu2 %v229_v41 }
  0x46   : > { %330 = vmatpush.msra.mxu1 %v230_v42  ;;  %491 = vmatpush.msra.mxu3 %v230_v42 }
  0x47   : > { %457 = vmatmul.msk.f32.vlgmr.msra.gmra.mxu0 %vm273_vm0, %v225_v43  ;;  %459 = vmatmul.msk.f32.vlgmr.msra.gmra.mxu2 %vm273_vm0, %v227_v44 }
  0x48   : > { %461 = vmatmul.msk.f32.vlgmr.msra.gmra.mxu1 %vm273_vm0, %v225_v43  ;;  %463 = vmatmul.msk.f32.vlgmr.msra.gmra.mxu3 %vm273_vm0, %v227_v44 }
  0x49   : > { %270 = vperm.xlu1 %520, %v252_v45   ;;  %260 = vperm.xlu0 %519, %v250_v46  }
  0x4f   : > { %458 = vmatmul.msk.f32.gmra.mxu0 %vm273_vm0, %v226_v47  ;;  %460 = vmatmul.msk.f32.gmra.mxu2 %vm273_vm0, %v228_v48 }
  0x50   : > { %462 = vmatmul.msk.f32.gmra.mxu1 %vm273_vm0, %v226_v47  ;;  %464 = vmatmul.msk.f32.gmra.mxu3 %vm273_vm0, %v228_v48 }
  0xa4   : > { %v256_v49 = vpop.permute.xlu0 %255  ;;  %v266_v54 = vpop.permute.xlu1 %265 }
  0xbb   : > { %v261_v58 = vpop.permute.xlu0 %260  ;;  %v271_v0 = vpop.permute.xlu1 %270 }
  0xc4   : > { %v303_v50 = vpop.f32.mrf.mxu0 }
  0xc5   : > { %v304_v51 = vadd.f32 %v303_v50, %v256_v49  ;;  %v332_v52 = vpop.f32.mrf.mxu1 }
  0xc6   : > { %v333_v53 = vadd.f32 %v332_v52, %v256_v49 }
  0xc7   : > { %344 = vst [vmem:[%s711_s29] sm:$0xff] %v304_v51 }
  0xc8   : > { %345 = vst [vmem:[%s711_s29 + $0x8] sm:$0xff] %v333_v53 }
  0xca   : > { %v309_v55 = vpop.f32.mrf.mxu2 }
  0xcb   : > { %v310_v56 = vadd.f32 %v309_v55, %v266_v54  ;;  %v338_v57 = vpop.f32.mrf.mxu3 }
  0xcc   : > { %v339_v59 = vadd.f32 %v338_v57, %v266_v54  ;;  %v306_v60 = vpop.f32.mrf.mxu0 }
  0xcd   : > { %348 = vst [vmem:[%s711_s29 + $0x20] sm:$0xff] %v310_v56  ;;  %v307_v61 = vadd.f32 %v306_v60, %v261_v58  ;;  %v335_v62 = vpop.f32.mrf.mxu1 }
  0xce   : > { %349 = vst [vmem:[%s711_s29 + $0x28] sm:$0xff] %v339_v59  ;;  %v336_v63 = vadd.f32 %v335_v62, %v261_v58  ;;  %v374_v5 = vld [vmem:[%s711_s29] sm:$0xff] (%p596_p5) }
  0xcf   : > { %346 = vst [vmem:[%s711_s29 + $0x10] sm:$0xff] %v307_v61  ;;  %v376_v6 = vld [vmem:[%s711_s29 + $0x8] sm:$0xff] (%p596_p5) }
  0xd0   : > { %347 = vst [vmem:[%s711_s29 + $0x18] sm:$0xff] %v336_v63 }
  0xd1   : > { %375 = vst [vmem:[%s361_s4] sm:$0xff] (%p596_p5), %v374_v5 }
  0xd2   : > { %v312_v1 = vpop.f32.mrf.mxu2  ;;  %358 = sbr.rel (!%p596_p5) target bundleno = 223 (0xdf), region = 59  ;;  %377 = vst [vmem:[%s361_s4 + $0x8] sm:$0xff] (%p596_p5), %v376_v6 }
  0xd3   : > { %v313_v2 = vadd.f32 %v312_v1, %v271_v0  ;;  %v341_v3 = vpop.f32.mrf.mxu3 }
  0xd4   : > { %v342_v4 = vadd.f32 %v341_v3, %v271_v0  ;;  %v382_v9 = vld [vmem:[%s711_s29 + $0x20] sm:$0xff] (%p596_p5) }
  0xd5   : > { %350 = vst [vmem:[%s711_s29 + $0x30] sm:$0xff] %v313_v2  ;;  %v384_v10 = vld [vmem:[%s711_s29 + $0x28] sm:$0xff] (%p596_p5) }
  0xd6   : > { %351 = vst [vmem:[%s711_s29 + $0x38] sm:$0xff] %v342_v4  ;;  %v378_v7 = vld [vmem:[%s711_s29 + $0x10] sm:$0xff] (%p596_p5) }
  0xd7   : > { %v380_v8 = vld [vmem:[%s711_s29 + $0x18] sm:$0xff]  ;;  %379 = vst [vmem:[%s361_s4 + $0x20] sm:$0xff] %v378_v7 }
  0xd8   : > { %381 = vst [vmem:[%s361_s4 + $0x28] sm:$0xff] %v380_v8 }
  0xd9   : > { %383 = vst [vmem:[%s361_s4 + $0x40] sm:$0xff] %v382_v9 }
  0xda   : > { %385 = vst [vmem:[%s361_s4 + $0x48] sm:$0xff] %v384_v10 }
  0xdc   : > { %v386_v11 = vld [vmem:[%s711_s29 + $0x30] sm:$0xff] }
  0xdd   : > { %v388_v12 = vld [vmem:[%s711_s29 + $0x38] sm:$0xff]  ;;  %387 = vst [vmem:[%s361_s4 + $0x60] sm:$0xff] %v386_v11 }
  0xde   : > { %389 = vst [vmem:[%s361_s4 + $0x68] sm:$0xff] %v388_v12 }
  0xdf PF: > { %p10_p10 = scmp.ge.s32.totalorder %s583_s16, 4   ;;  %s751_s12 = smov %s539_s13 }
  0xe0   : > { %s752_s13 = smov %s594_s19  ;;  %s753_s14 = smov %s583_s16 }
  0xe1   :  { %12 = sbr.rel (!%p10_p10) target bundleno = 2 (0x2), region = 113 }

</bundles_post_ra>
